<compile_context>
chip_gen: v7x
topology: tpu7x:2x2x1
jax: 0.10.0
libtpu: 0.0.40
codegen_flags: <defaults>
</compile_context>

<pallas_src>
import functools

import jax
import jax.numpy as jnp
from jax.experimental import pallas as pl
from jax.experimental.pallas import tpu as pltpu


_MIB = 1024 * 1024


def _sublane(itemsize):
    # Sub-32-bit dtypes pack along sublanes: f32 -> 8, bf16 -> 16, int8/fp8 -> 32.
    return {4: 8, 2: 16, 1: 32}.get(int(itemsize), 8)


def _vmem_budget_bytes():
    """Usable VMEM budget in bytes (per TensorCore), with headroom for scratch."""
    cap = 64 * _MIB
    try:
        cap = int(pltpu.get_tpu_info().vmem_capacity_bytes)
    except Exception:
        pass
    # Clamp to the per-TC guarantee across v5e/v6e/v7x (v7x has 64 MiB/TC; a
    # per-chip report would otherwise overshoot). 8 MiB headroom is plenty for
    # this kernel (no large compiler scratch).
    cap = min(cap, 64 * _MIB)
    return max(16 * _MIB, cap - 8 * _MIB)


def _pick_block_rows(lead, n_pix, itemsize, vmem_budget):
    """Largest useful full-row block that fits VMEM. Returns 0 if none fits."""
    sub = _sublane(itemsize)

    # Per-element footprint in the single-pass kernel: input + output tiles,
    # each double-buffered at the I/O dtype, plus ~12 B of f32 temporaries
    # (upcast tile + centered tile) before register/VMEM reuse.
    per_row_bytes = n_pix * (4 * itemsize + 12)
    rows_fit = vmem_budget // per_row_bytes
    if rows_fit < sub:
        return 0  # even a minimal row block doesn't fit -> chunked path

    # Per-step input-tile target: ~8 MiB for f32, ~4 MiB for sub-32-bit dtypes
    # (their f32 temporaries dominate the footprint). Both already sit near the
    # HBM roofline, so the smaller tile costs ~nothing.
    tile_target = (8 if itemsize >= 4 else 4) * _MIB
    rows_target = max(sub, tile_target // (n_pix * itemsize))

    rows = min(rows_fit, rows_target)
    rows = max(sub, (rows // sub) * sub)

    rows_needed = ((lead + sub - 1) // sub) * sub
    rows = min(rows, rows_needed)

    # Megacore balance (v7x shards the "parallel" axis across 2 TCs): if the
    # whole input fits in only a few steps, split into an even number of
    # near-equal blocks instead of one big + one small block.
    n_steps = -(-lead // rows)
    if lead >= 2 * sub and n_steps <= 3:
        even_steps = max(2, n_steps + (n_steps & 1))
        bal = -(-lead // even_steps)
        rows = max(sub, ((bal + sub - 1) // sub) * sub)

    return int(rows)


# ----------------------------------------------------------------------------
# Single-pass kernel: full planes fit in one VMEM row block.
# ----------------------------------------------------------------------------
def _norm_kernel(x_ref, o_ref, *, n_pix, scale):
    # x_ref: (block_rows, n_pix) tile. Each row = one (b, c) plane.
    xf = x_ref[...].astype(jnp.float32)
    mean = jnp.sum(xf, axis=-1, keepdims=True) * (1.0 / n_pix)
    d = xf - mean                                 # centered tile, reused below
    if scale:
        # Two-pass (centered) unbiased variance: numerically robust even when
        # |mean| >> std; matches torch.std(ret) applied to the centered data.
        var = jnp.sum(d * d, axis=-1, keepdims=True) * (1.0 / (n_pix - 1))
        d = d * jax.lax.rsqrt(var)                # var==0 -> 0*inf = NaN (== torch 0/0)
    o_ref[...] = d.astype(o_ref.dtype)


# ----------------------------------------------------------------------------
# Chunked path (megapixel planes): pass 1 accumulates per-row sum / sumsq over
# pixel chunks; pass 2 applies (x - mean) * rstd elementwise.
# ----------------------------------------------------------------------------
def _stats_kernel(x_ref, mean_ref, rstd_ref, sum_sc, ssq_sc, *, n_pix, chunk, scale):
    k = pl.program_id(1)

    @pl.when(k == 0)
    def _():
        sum_sc[...] = jnp.zeros_like(sum_sc)
        ssq_sc[...] = jnp.zeros_like(ssq_sc)

    xf = x_ref[...].astype(jnp.float32)
    if n_pix % chunk != 0:
        # Mask the padded columns of the partial last chunk so garbage does not
        # contaminate the row sums.
        rem = n_pix - k * chunk
        col = jax.lax.broadcasted_iota(jnp.int32, xf.shape, 1)
        xf = jnp.where(col < rem, xf, 0.0)

    sum_sc[...] += jnp.sum(xf, axis=-1, keepdims=True)
    if scale:
        ssq_sc[...] += jnp.sum(xf * xf, axis=-1, keepdims=True)

    @pl.when(k == pl.num_programs(1) - 1)
    def _():
        s = sum_sc[...]
        mean = s * (1.0 / n_pix)
        mean_ref[...] = mean
        if scale:
            # Fused form is unavoidable here (single sweep over chunks); clamp
            # tiny cancellation negatives.
            var = (ssq_sc[...] - s * mean) * (1.0 / (n_pix - 1))
            var = jnp.maximum(var, 0.0)
            rstd_ref[...] = jax.lax.rsqrt(var)
        else:
            rstd_ref[...] = jnp.ones_like(rstd_ref)


def _apply_kernel(x_ref, mean_ref, rstd_ref, o_ref, *, scale):
    xf = x_ref[...].astype(jnp.float32)
    d = xf - mean_ref[...]
    if scale:
        d = d * rstd_ref[...]
    o_ref[...] = d.astype(o_ref.dtype)


def _norm_chunked(x2d, lead, n_pix, scale, itemsize, vmem_budget, out_dtype, chunk=None):
    sub = _sublane(itemsize)
    rows_c = sub

    if chunk is None:
        per_elem = 4 * itemsize + 12
        chunk_fit = vmem_budget // (rows_c * per_elem)
        chunk_target = (4 * _MIB) // (rows_c * itemsize)
        chunk = min(chunk_fit, chunk_target, n_pix)
        chunk = max(128, (chunk // 128) * 128)
    if chunk >= n_pix:
        chunk = n_pix
    else:
        assert chunk % 128 == 0, "pixel chunk must be a multiple of 128 lanes"
    chunk = int(chunk)

    nr = int(pl.cdiv(lead, rows_c))
    nk = int(pl.cdiv(n_pix, chunk))

    stats_kernel = functools.partial(_stats_kernel, n_pix=n_pix, chunk=chunk, scale=scale)
    mean, rstd = pl.pallas_call(
        stats_kernel,
        out_shape=(jax.ShapeDtypeStruct((lead, 1), jnp.float32),
                   jax.ShapeDtypeStruct((lead, 1), jnp.float32)),
        grid_spec=pltpu.PrefetchScalarGridSpec(
            num_scalar_prefetch=0,
            grid=(nr, nk),
            in_specs=[pl.BlockSpec((rows_c, chunk), lambda i, k: (i, k))],
            out_specs=[pl.BlockSpec((rows_c, 1), lambda i, k: (i, 0)),
                       pl.BlockSpec((rows_c, 1), lambda i, k: (i, 0))],
            scratch_shapes=[pltpu.VMEM((rows_c, 1), jnp.float32),
                            pltpu.VMEM((rows_c, 1), jnp.float32)],
        ),
        compiler_params=pltpu.CompilerParams(
            dimension_semantics=("parallel", "arbitrary"),
            vmem_limit_bytes=int(vmem_budget),
        ),
    )(x2d)

    apply_kernel = functools.partial(_apply_kernel, scale=scale)
    out2d = pl.pallas_call(
        apply_kernel,
        out_shape=jax.ShapeDtypeStruct((lead, n_pix), out_dtype),
        grid_spec=pltpu.PrefetchScalarGridSpec(
            num_scalar_prefetch=0,
            grid=(nr, nk),
            in_specs=[pl.BlockSpec((rows_c, chunk), lambda i, k: (i, k)),
                      pl.BlockSpec((rows_c, 1), lambda i, k: (i, 0)),
                      pl.BlockSpec((rows_c, 1), lambda i, k: (i, 0))],
            out_specs=pl.BlockSpec((rows_c, chunk), lambda i, k: (i, k)),
        ),
        compiler_params=pltpu.CompilerParams(
            dimension_semantics=("parallel", "parallel"),
            vmem_limit_bytes=int(vmem_budget),
        ),
    )(x2d, mean, rstd)
    return out2d


def norm_forward(image, mask=None, *, scale=True, block_rows=None,
                 _force_chunked=False, _chunk=None):
    """Pallas equivalent of Norm.forward.

    image: (..., H, W) array (e.g. NCHW). Normalization is independent over the
    last two dims. Returns same shape/dtype as the input (plus the mask, passed
    through unchanged, if given).
    """
    orig_shape = image.shape
    assert image.ndim >= 2, "Norm expects at least 2 spatial dims"
    H, W = orig_shape[-2], orig_shape[-1]
    n_pix = H * W
    if scale:
        assert n_pix > 1, "unbiased std (ddof=1) undefined for a single pixel"

    lead = 1
    for d in orig_shape[:-2]:
        lead *= d

    x2d = image.reshape(lead, n_pix)

    itemsize = jnp.dtype(image.dtype).itemsize
    vmem_budget = _vmem_budget_bytes()
    if block_rows is None:
        block_rows = _pick_block_rows(lead, n_pix, itemsize, vmem_budget)

    if _force_chunked or block_rows == 0:
        out2d = _norm_chunked(x2d, lead, n_pix, scale, itemsize, vmem_budget,
                              image.dtype, chunk=_chunk)
    else:
        grid = (int(pl.cdiv(lead, block_rows)),)
        kernel = functools.partial(_norm_kernel, n_pix=n_pix, scale=scale)
        out2d = pl.pallas_call(
            kernel,
            out_shape=jax.ShapeDtypeStruct((lead, n_pix), image.dtype),
            grid_spec=pltpu.PrefetchScalarGridSpec(
                num_scalar_prefetch=0,
                grid=grid,
                in_specs=[pl.BlockSpec((block_rows, n_pix), lambda i: (i, 0))],
                out_specs=pl.BlockSpec((block_rows, n_pix), lambda i: (i, 0)),
            ),
            compiler_params=pltpu.CompilerParams(
                dimension_semantics=("parallel",),
                vmem_limit_bytes=int(vmem_budget),
            ),
        )(x2d)

    out = out2d.reshape(orig_shape)
    if mask is None:
        return out
    return (out, mask)


def _reference(image, scale=True):
    ret = image - jnp.mean(image, axis=(-2, -1), keepdims=True)
    if scale:
        ret = ret / jnp.std(ret, axis=(-2, -1), keepdims=True, ddof=1)
    return ret


if __name__ == "__main__":
    key = jax.random.PRNGKey(0)

    # Small NCHW input consistent with the module's image semantics.
    B, C, H, W = 2, 4, 16, 16
    x = jax.random.normal(key, (B, C, H, W), dtype=jnp.float32) * 3.0 + 1.5

    out = jax.block_until_ready(norm_forward(x, scale=True))
    ref = _reference(x, scale=True)
    assert out.shape == x.shape and out.dtype == x.dtype
    assert jnp.allclose(out, ref, atol=1e-5, rtol=1e-5), "scale=True mismatch"

    # scale=False path.
    out_ns = jax.block_until_ready(norm_forward(x, scale=False))
    assert jnp.allclose(out_ns, _reference(x, scale=False), atol=1e-5, rtol=1e-5)

    # Ragged lead (not a multiple of the row block): masked partial final block.
    x_rag = jax.random.normal(jax.random.PRNGKey(1), (3, 20, 24), jnp.float32)
    out_rag = jax.block_until_ready(norm_forward(x_rag, scale=True))
    assert jnp.allclose(out_rag, _reference(x_rag, scale=True), atol=1e-5, rtol=1e-5)

    # Plain 2D image (single plane).
    x2 = jax.random.normal(jax.random.PRNGKey(2), (16, 16), jnp.float32) * 2.0 - 0.7
    out2 = jax.block_until_ready(norm_forward(x2, scale=True))
    assert jnp.allclose(out2, _reference(x2, scale=True), atol=1e-5, rtol=1e-5)

    # Mask passthrough path.
    mask = jnp.ones((B, C, H, W), dtype=jnp.float32)
    out_m, mask_out = norm_forward(x, mask, scale=True)
    jax.block_until_ready(out_m)
    assert mask_out is mask
    assert jnp.allclose(out_m, ref, atol=1e-5, rtol=1e-5)

    # Chunked (megapixel-plane) path, forced small for testing; chunk=384 makes
    # the last pixel chunk partial and exercises the in-kernel column mask.
    x_big = jax.random.normal(jax.random.PRNGKey(3), (2, 3, 32, 32), jnp.float32) * 3.0 + 1.5
    out_ck = jax.block_until_ready(
        norm_forward(x_big, scale=True, _force_chunked=True, _chunk=384))
    assert jnp.allclose(out_ck, _reference(x_big, scale=True), atol=1e-5, rtol=1e-5)

    out_ck_ns = jax.block_until_ready(
        norm_forward(x_big, scale=False, _force_chunked=True, _chunk=256))
    assert jnp.allclose(out_ck_ns, _reference(x_big, scale=False), atol=1e-5, rtol=1e-5)

    print("KERNEL_OK")
</pallas_src>

<mosaic_0001>
module attributes {stable_mosaic.version = 11 : i64} {
  func.func @_norm_kernel(%arg0: i32, %arg1: memref<8x256xf32, #tpu.memory_space<vmem>>, %arg2: memref<8x256xf32, #tpu.memory_space<vmem>>) attributes {dimension_semantics = [#tpu.dimension_semantics<parallel>], iteration_bounds = array<i64: 1>, scalar_prefetch = 0 : i64, scratch_operands = 0 : i64, tpu.core_type = #tpu.core_type<tc>, window_params = [{transform_indices = @transform_0, window_bounds = array<i64: 8, 256>}, {transform_indices = @transform_1, window_bounds = array<i64: 8, 256>}]} {
    %c0 = arith.constant 0 : index
    %c0_0 = arith.constant 0 : index
    %0 = vector.load %arg1[%c0, %c0_0] : memref<8x256xf32, #tpu.memory_space<vmem>>, vector<8x256xf32>
    %cst = arith.constant dense<0.000000e+00> : vector<8xf32>
    %1 = vector.multi_reduction <add>, %0, %cst [1] : vector<8x256xf32> to vector<8xf32>
    %2 = vector.shape_cast %1 : vector<8xf32> to vector<8x1xf32>
    %cst_1 = arith.constant 3.906250e-03 : f32
    %3 = vector.broadcast %cst_1 : f32 to vector<8x1xf32>
    %4 = arith.mulf %2, %3 : vector<8x1xf32>
    %5 = vector.broadcast %4 : vector<8x1xf32> to vector<8x256xf32>
    %6 = arith.subf %0, %5 : vector<8x256xf32>
    %7 = arith.mulf %6, %6 : vector<8x256xf32>
    %cst_2 = arith.constant dense<0.000000e+00> : vector<8xf32>
    %8 = vector.multi_reduction <add>, %7, %cst_2 [1] : vector<8x256xf32> to vector<8xf32>
    %9 = vector.shape_cast %8 : vector<8xf32> to vector<8x1xf32>
    %cst_3 = arith.constant 0.00392156886 : f32
    %10 = vector.broadcast %cst_3 : f32 to vector<8x1xf32>
    %11 = arith.mulf %9, %10 : vector<8x1xf32>
    %12 = math.rsqrt %11 : vector<8x1xf32>
    %13 = vector.broadcast %12 : vector<8x1xf32> to vector<8x256xf32>
    %14 = arith.mulf %6, %13 : vector<8x256xf32>
    %c0_4 = arith.constant 0 : index
    %c0_5 = arith.constant 0 : index
    %15 = vector.load %arg2[%c0_4, %c0_5] : memref<8x256xf32, #tpu.memory_space<vmem>>, vector<8x256xf32>
    tpu.vector_store %arg2[%c0_4, %c0_5], %14 {strides = array<i32>} : memref<8x256xf32, #tpu.memory_space<vmem>>, vector<8x256xf32>,
    return
  }
  func.func @transform_0(%arg0: i32) -> (i32, i32) {
    %c0_i32 = arith.constant 0 : i32
    %c0_i32_0 = arith.constant 0 : i32
    return %arg0, %c0_i32 : i32, i32
  }
  func.func @transform_1(%arg0: i32) -> (i32, i32) {
    %c0_i32 = arith.constant 0 : i32
    %c0_i32_0 = arith.constant 0 : i32
    return %arg0, %c0_i32 : i32, i32
  }
}

</mosaic_0001>

<bundles_post_ra>
// kernel: tpu_custom_call.1
= control target key start
LH: loop header
LB: loop body
LE: loop exit
PB: predicated region body
PF: predicated region fallthrough
CT: control target
= control target key end

     0   :  { %6 = vsyncpa [#allocation3], 0  ;;  %s143_s0 = inlined_call_operand.hbm [shape: f32[8,256], index: 0, kind: input, shape index: {}]   ;;  %s144_s1 = inlined_call_operand.hbm [shape: f32[8,256], index: 1, kind: output, shape index: {}]  }
   0x1   :  { %7 = vsyncpa [#allocation4], 0  ;;  %s107_s6 = smov [#allocation2]   ;;  %s59_s10 = scalar_lea.hbm %s143_s0, 256 }
   0x2   :  { %s14_s7 = sshll.u32 %s107_s6, 4  ;;  %p60_p0 = scmp.ne.s32.totalorder %s143_s0, %s59_s10  ;;  %s15_s7 = int_to_ptr.vmem [resolvable:$true] %s14_s7 }
   0x3   :  { %p63_p1 = scmp.lt.u32.totalorder %s59_s10, %s143_s0 }
   0x5   :  { %p65_p2 = pnand %p63_p1, %p60_p0 }
   0x7   :  { %68 = shalt.err (!%p65_p2)
}
   0x8   :  { %s69_s15 = scalar_lea.vmem %s15_s7, 256  ;;  %p74_p4 = scmp.lt.s32.totalorder %s15_s7, %s15_s7 }
   0x9   :  { %p70_p3 = scmp.ne.s32.totalorder %s15_s7, %s69_s15  ;;  %p75_p5 = scmp.lt.s32.totalorder %s69_s15, %s69_s15 }
   0xb   :  { %p76_p6 = por %p75_p5, %p74_p4 }
   0xd   :  { %p77_p7 = pnand %p76_p6, %p70_p3 }
   0xf   :  { %80 = shalt.err (!%p77_p7)
}
  0x10   :  { %17 = dma.hbm_to_vmem [thread:$0]  %s143_s0, 256, %s15_s7, [#allocation3]  }
  0x11   :  { %103 = dma.done.wait [#allocation3], 256  }
  0x12   :  { %104 = vsyncadd [#allocation3], 4294967040  ;;  %v21_v0 = vld [vmem:[#allocation2] sm:$0xff]  ;;  %v22_v1 = vld [vmem:[#allocation2 + $0x8] sm:$0xff]  ;;  %s108_s18 = smov [#allocation5]  }
  0x13   :  { %v23_v2 = vadd.f32 %v22_v1, %v21_v0  ;;  %s46_s19 = sshll.u32 %s108_s18, 4  ;;  %s47_s19 = int_to_ptr.vmem [resolvable:$true] %s46_s19 }
  0x14   :  { %s81_s0 = scalar_lea.vmem %s47_s19, 256  ;;  %p86_p9 = scmp.lt.s32.totalorder %s47_s19, %s47_s19 }
  0x15   :  { %24 = vadd.xlane.f32.xlu0 %v23_v2  ;;  %p82_p8 = scmp.ne.s32.totalorder %s47_s19, %s81_s0  ;;  %p87_p10 = scmp.lt.s32.totalorder %s81_s0, %s81_s0 }
  0x17   :  { %p88_p11 = por %p87_p10, %p86_p9 }
  0x19   :  { %p89_p12 = pnand %p88_p11, %p82_p8 }
  0xa2   :  { %v25_v3 = vpop.xlane.xlu0 %24 }
  0xa3   :  { %v26_v4 = vmul.f32 0.00390625, %v25_v3 }
  0xa5   :  { %v27_v5 = vsub.f32 %v21_v0, %v26_v4  ;;  %v28_v6 = vsub.f32 %v22_v1, %v26_v4 }
  0xa7   :  { %v29_v7 = vmul.f32 %v27_v5, %v27_v5  ;;  %v30_v8 = vmul.f32 %v28_v6, %v28_v6 }
  0xa9   :  { %v31_v9 = vadd.f32 %v30_v8, %v29_v7 }
  0xab   :  { %32 = vadd.xlane.f32.xlu0 %v31_v9 }
 0x138   :  { %v33_v10 = vpop.xlane.xlu0 %32 }
 0x139   :  { %v34_v11 = vmul.f32 0.003921569, %v33_v10 }
 0x13b   :  { %57 = vrsqrt.f32 %v34_v11 }
 0x145   :  { %v58_v12 = vpop.eup %57 }
 0x146   :  { %v36_v13 = vmul.f32 %v58_v12, %v27_v5  ;;  %v37_v14 = vmul.f32 %v58_v12, %v28_v6 }
 0x148   :  { %38 = vst [vmem:[#allocation5] sm:$0xff] %v36_v13  ;;  %39 = vst [vmem:[#allocation5 + $0x8] sm:$0xff] %v37_v14 }
 0x149   :  { %92 = shalt.err (!%p89_p12)
}
 0x14a   :  { %s93_s22 = scalar_lea.hbm %s144_s1, 256 }
 0x14b   :  { %p94_p13 = scmp.ne.s32.totalorder %s144_s1, %s93_s22  ;;  %p97_p0 = scmp.lt.u32.totalorder %s93_s22, %s144_s1 }
 0x14d   :  { %p99_p1 = pnand %p97_p0, %p94_p13 }
 0x14f   :  { %102 = shalt.err (!%p99_p1)
}
 0x150   :  { %49 = dma.vmem_to_hbm [thread:$0]  %s47_s19, 256, %s144_s1, [#allocation4]  }
 0x151   :  { %105 = dma.done.wait [#allocation4], 256  }
 0x152   :  { %106 = vsyncadd [#allocation4], 4294967040 }
 0x153   :  { %53 = vsyncpa [#allocation3], 1 }
 0x154   :  { %54 = vsyncpa [#allocation4], 1 }

</bundles_post_ra>
